<compile_context>
chip_gen: v5e
topology: v5e:2x2
jax: 0.10.0
libtpu: 0.0.40
codegen_flags: <defaults>
</compile_context>

<pallas_src>
import jax
import jax.numpy as jnp
import numpy as np
from jax import lax
from jax.experimental import pallas as pl
from jax.experimental.pallas import tpu as pltpu

ALPHA = 0.5
EPS = 1e-6
_SUB = 8       # sublane granularity: accumulator rows / inner-loop chunk
_NUM_PAR = 2   # leading 'parallel' grid axis: uses both TCs on v7x; on
               # single-TC v5e/v6e it just runs sequentially (harmless)


def _combined_loss_kernel(p_ref, t_ref, out_ref, tp_acc, spt_acc, bce_acc):
    i = pl.program_id(1)
    n_steps = pl.num_programs(1)

    @pl.when(i == 0)
    def _init():
        tp_acc[...] = jnp.zeros_like(tp_acc)
        spt_acc[...] = jnp.zeros_like(spt_acc)
        bce_acc[...] = jnp.zeros_like(bce_acc)

    tile_n, cp = p_ref.shape            # static
    g = tile_n // _SUB

    # Single fused pass: each (8, Cp) sub-block of p and t is loaded from VMEM
    # exactly once; all three partial sums stay vreg-resident in the carry.
    def body(j, carry):
        tp_c, spt_c, bce_c = carry
        row = pl.multiple_of(j * _SUB, _SUB)
        p = p_ref[pl.ds(row, _SUB), :]
        t = t_ref[pl.ds(row, _SUB), :]
        # PyTorch BCELoss clamps log at -100.
        log_p = jnp.maximum(jnp.log(p), -100.0)
        log_1mp = jnp.maximum(jnp.log(1.0 - p), -100.0)
        # +(t*log p + (1-t)*log(1-p)); the global negate happens in the wrapper.
        bce_pos = t * (log_p - log_1mp) + log_1mp
        return (tp_c + p * t, spt_c + (p + t), bce_c + bce_pos)

    zeros = jnp.zeros((_SUB, cp), jnp.float32)
    tp_c, spt_c, bce_c = lax.fori_loop(
        0, g, body, (zeros, zeros, zeros), unroll=min(g, 8))

    # One scratch read-modify-write per accumulator per grid step.
    tp_acc[...] += tp_c
    spt_acc[...] += spt_c
    bce_acc[...] += bce_c

    @pl.when(i == n_steps - 1)
    def _finalize():
        # Cross-sublane (XLU) reductions happen exactly once per core.
        tp = jnp.sum(tp_acc[...], axis=0)       # (Cp,)
        spt = jnp.sum(spt_acc[...], axis=0)     # (Cp,)
        bces = jnp.sum(bce_acc[...], axis=0)    # (Cp,)
        out_ref[...] = jnp.stack([tp, spt, bces])[None, :, :]


def combined_loss(predictions, targets, *, alpha=ALPHA):
    predictions = predictions.astype(jnp.float32)
    targets = targets.astype(jnp.float32)
    N, C = predictions.shape

    # --- lane packing for small class counts (make vregs lane-dense) ---
    if C < 128 and 128 % C == 0:
        k = 128 // C
    else:
        k = 1
    cp = k * C

    # --- generation-aware VMEM budget ---
    try:
        vmem_cap = int(pltpu.get_tpu_info().vmem_capacity_bytes)
    except Exception:
        vmem_cap = 64 * 1024 * 1024            # conservative fallback
    if vmem_cap >= 100 * 1024 * 1024:          # v5e / v6e: 128 MiB physical
        inflight_budget = 48 * 1024 * 1024
        vmem_limit = 80 * 1024 * 1024
    else:                                       # v7x: 64 MiB per TC
        inflight_budget = 24 * 1024 * 1024
        vmem_limit = 44 * 1024 * 1024

    # Tile rows (packed): 2 f32 inputs x 2 pipeline buffers must fit the budget.
    bytes_per_row = cp * 4 * 2 * 2
    max_rows = max(_SUB, (inflight_budget // bytes_per_row) // _SUB * _SUB)

    packed_rows = pl.cdiv(N, k)
    rows_per_core = pl.cdiv(packed_rows, _NUM_PAR)
    rows_per_core = pl.cdiv(rows_per_core, _SUB) * _SUB
    tile_n = min(max_rows, rows_per_core)
    steps = pl.cdiv(rows_per_core, tile_n)
    padded_packed = _NUM_PAR * steps * tile_n
    n_total = padded_packed * k

    # Zero-pad the batch: p = t = 0 rows contribute exactly 0 to TP, sum(p+t)
    # and the clamped BCE sum.
    if n_total != N:
        pad = ((0, n_total - N), (0, 0))
        predictions = jnp.pad(predictions, pad)
        targets = jnp.pad(targets, pad)

    p_packed = predictions.reshape(padded_packed, cp)
    t_packed = targets.reshape(padded_packed, cp)

    parts = pl.pallas_call(
        _combined_loss_kernel,
        out_shape=jax.ShapeDtypeStruct((_NUM_PAR, 3, cp), jnp.float32),
        grid_spec=pltpu.PrefetchScalarGridSpec(
            num_scalar_prefetch=0,
            grid=(_NUM_PAR, steps),
            in_specs=[
                pl.BlockSpec((tile_n, cp), lambda c, i: (c * steps + i, 0)),
                pl.BlockSpec((tile_n, cp), lambda c, i: (c * steps + i, 0)),
            ],
            out_specs=pl.BlockSpec((1, 3, cp), lambda c, i: (c, 0, 0)),
            scratch_shapes=[
                pltpu.VMEM((_SUB, cp), jnp.float32),   # sum(p * t)   (TP)
                pltpu.VMEM((_SUB, cp), jnp.float32),   # sum(p + t)
                pltpu.VMEM((_SUB, cp), jnp.float32),   # sum(+BCE terms)
            ],
        ),
        compiler_params=pltpu.CompilerParams(
            dimension_semantics=("parallel", "arbitrary"),
            vmem_limit_bytes=vmem_limit,
        ),
    )(p_packed, t_packed)

    # Tiny finalize in JAX: combine per-core partials, fold lane groups,
    # compute F1 and the (negated) BCE mean with the *real* N*C.
    tp = jnp.sum(parts[:, 0, :], axis=0).reshape(k, C).sum(axis=0)     # (C,)
    spt = jnp.sum(parts[:, 1, :], axis=0).reshape(k, C).sum(axis=0)    # (C,)
    bce_sum = jnp.sum(parts[:, 2, :])
    # 2*TP + FP + FN == sum(p) + sum(t)
    f1 = 2.0 * tp / (spt + EPS)
    f1_loss = 1.0 - jnp.mean(f1)
    bce_mean = -bce_sum / float(N * C)
    return alpha * bce_mean + (1.0 - alpha) * f1_loss


def combined_loss_ref(predictions, targets, alpha=ALPHA):
    log_p = jnp.maximum(jnp.log(predictions), -100.0)
    log_1mp = jnp.maximum(jnp.log(1.0 - predictions), -100.0)
    bce = jnp.mean(-(targets * log_p + (1.0 - targets) * log_1mp))
    tp = jnp.sum(predictions * targets, axis=0)
    fp = jnp.sum((1.0 - targets) * predictions, axis=0)
    fn = jnp.sum(targets * (1.0 - predictions), axis=0)
    f1 = 2.0 * tp / (2.0 * tp + fp + fn + EPS)
    return alpha * bce + (1.0 - alpha) * (1.0 - jnp.mean(f1))


if __name__ == "__main__":
    key = jax.random.PRNGKey(0)
    k1, k2, k3, k4 = jax.random.split(key, 4)

    # Case 1: batch=16, num_classes=128 (lane-dense, evenly tiled).
    N1, C1 = 16, 128
    p1 = jax.nn.sigmoid(jax.random.normal(k1, (N1, C1), dtype=jnp.float32))
    t1 = jax.random.bernoulli(k2, p=0.3, shape=(N1, C1)).astype(jnp.float32)
    loss1 = jax.block_until_ready(combined_loss(p1, t1))
    ref1 = combined_loss_ref(p1, t1)
    assert np.allclose(np.asarray(loss1), np.asarray(ref1),
                       rtol=1e-5, atol=1e-5), (loss1, ref1)

    # Case 2: ragged batch + small C=64 (exercises zero-pad + lane-pack paths).
    N2, C2 = 50, 64
    p2 = jax.nn.sigmoid(jax.random.normal(k3, (N2, C2), dtype=jnp.float32))
    t2 = jax.random.bernoulli(k4, p=0.5, shape=(N2, C2)).astype(jnp.float32)
    loss2 = jax.block_until_ready(combined_loss(p2, t2))
    ref2 = combined_loss_ref(p2, t2)
    assert np.allclose(np.asarray(loss2), np.asarray(ref2),
                       rtol=1e-5, atol=1e-5), (loss2, ref2)

    print("KERNEL_OK")
</pallas_src>

<mosaic_0001>
module attributes {stable_mosaic.version = 11 : i64} {
  func.func @_combined_loss_kernel(%arg0: i32, %arg1: i32, %arg2: memref<8x128xf32, #tpu.memory_space<vmem>>, %arg3: memref<8x128xf32, #tpu.memory_space<vmem>>, %arg4: memref<1x3x128xf32, #tpu.memory_space<vmem>>, %arg5: memref<8x128xf32, #tpu.memory_space<vmem>>, %arg6: memref<8x128xf32, #tpu.memory_space<vmem>>, %arg7: memref<8x128xf32, #tpu.memory_space<vmem>>) attributes {dimension_semantics = [#tpu.dimension_semantics<parallel>, #tpu.dimension_semantics<arbitrary>], iteration_bounds = array<i64: 2, 1>, scalar_prefetch = 0 : i64, scratch_operands = 3 : i64, tpu.core_type = #tpu.core_type<tc>, window_params = [{transform_indices = @transform_0, window_bounds = array<i64: 8, 128>}, {transform_indices = @transform_1, window_bounds = array<i64: 8, 128>}, {transform_indices = @transform_2, window_bounds = array<i64: 1, 3, 128>}]} {
    %c0_i32 = arith.constant 0 : i32
    %0 = arith.cmpi eq, %arg1, %c0_i32 : i32
    %1 = arith.extui %0 : i1 to i32
    %c0_i32_0 = arith.constant 0 : i32
    %2 = arith.cmpi ne, %1, %c0_i32_0 : i32
    scf.if %2 {
      %cst_20 = arith.constant 0.000000e+00 : f32
      %38 = vector.broadcast %cst_20 : f32 to vector<8x128xf32>
      %c0_21 = arith.constant 0 : index
      %c0_22 = arith.constant 0 : index
      %39 = vector.load %arg5[%c0_21, %c0_22] : memref<8x128xf32, #tpu.memory_space<vmem>>, vector<8x128xf32>
      tpu.vector_store %arg5[%c0_21, %c0_22], %38 {strides = array<i32>} : memref<8x128xf32, #tpu.memory_space<vmem>>, vector<8x128xf32>,
      %cst_23 = arith.constant 0.000000e+00 : f32
      %40 = vector.broadcast %cst_23 : f32 to vector<8x128xf32>
      %c0_24 = arith.constant 0 : index
      %c0_25 = arith.constant 0 : index
      %41 = vector.load %arg6[%c0_24, %c0_25] : memref<8x128xf32, #tpu.memory_space<vmem>>, vector<8x128xf32>
      tpu.vector_store %arg6[%c0_24, %c0_25], %40 {strides = array<i32>} : memref<8x128xf32, #tpu.memory_space<vmem>>, vector<8x128xf32>,
      %cst_26 = arith.constant 0.000000e+00 : f32
      %42 = vector.broadcast %cst_26 : f32 to vector<8x128xf32>
      %c0_27 = arith.constant 0 : index
      %c0_28 = arith.constant 0 : index
      %43 = vector.load %arg7[%c0_27, %c0_28] : memref<8x128xf32, #tpu.memory_space<vmem>>, vector<8x128xf32>
      tpu.vector_store %arg7[%c0_27, %c0_28], %42 {strides = array<i32>} : memref<8x128xf32, #tpu.memory_space<vmem>>, vector<8x128xf32>,
    } else {
    }
    %cst = arith.constant 0.000000e+00 : f32
    %3 = vector.broadcast %cst : f32 to vector<8x128xf32>
    %c0_i32_1 = arith.constant 0 : i32
    %c8_i32 = arith.constant 8 : i32
    %4 = arith.muli %c0_i32_1, %c8_i32 : i32
    %5 = tpu.assume_multiple %4, 8 : i32
    %6 = arith.index_cast %5 : i32 to index
    %c0 = arith.constant 0 : index
    %7 = vector.load %arg2[%6, %c0] : memref<8x128xf32, #tpu.memory_space<vmem>>, vector<8x128xf32>
    %8 = arith.index_cast %5 : i32 to index
    %c0_2 = arith.constant 0 : index
    %9 = vector.load %arg3[%8, %c0_2] : memref<8x128xf32, #tpu.memory_space<vmem>>, vector<8x128xf32>
    %10 = math.log %7 : vector<8x128xf32>
    %cst_3 = arith.constant -1.000000e+02 : f32
    %11 = vector.broadcast %cst_3 : f32 to vector<8x128xf32>
    %12 = arith.maximumf %10, %11 : vector<8x128xf32>
    %cst_4 = arith.constant 1.000000e+00 : f32
    %13 = vector.broadcast %cst_4 : f32 to vector<8x128xf32>
    %14 = arith.subf %13, %7 : vector<8x128xf32>
    %15 = math.log %14 : vector<8x128xf32>
    %cst_5 = arith.constant -1.000000e+02 : f32
    %16 = vector.broadcast %cst_5 : f32 to vector<8x128xf32>
    %17 = arith.maximumf %15, %16 : vector<8x128xf32>
    %18 = arith.subf %12, %17 : vector<8x128xf32>
    %19 = arith.mulf %9, %18 : vector<8x128xf32>
    %20 = arith.addf %19, %17 : vector<8x128xf32>
    %21 = arith.mulf %7, %9 : vector<8x128xf32>
    %22 = arith.addf %3, %21 : vector<8x128xf32>
    %23 = arith.addf %7, %9 : vector<8x128xf32>
    %24 = arith.addf %3, %23 : vector<8x128xf32>
    %25 = arith.addf %3, %20 : vector<8x128xf32>
    %c1_i32 = arith.constant 1 : i32
    %c0_6 = arith.constant 0 : index
    %c0_7 = arith.constant 0 : index
    %26 = vector.load %arg5[%c0_6, %c0_7] : memref<8x128xf32, #tpu.memory_space<vmem>>, vector<8x128xf32>
    %27 = arith.addf %26, %22 : vector<8x128xf32>
    %c0_8 = arith.constant 0 : index
    %c0_9 = arith.constant 0 : index
    %28 = vector.load %arg5[%c0_8, %c0_9] : memref<8x128xf32, #tpu.memory_space<vmem>>, vector<8x128xf32>
    tpu.vector_store %arg5[%c0_8, %c0_9], %27 {strides = array<i32>} : memref<8x128xf32, #tpu.memory_space<vmem>>, vector<8x128xf32>,
    %c0_10 = arith.constant 0 : index
    %c0_11 = arith.constant 0 : index
    %29 = vector.load %arg6[%c0_10, %c0_11] : memref<8x128xf32, #tpu.memory_space<vmem>>, vector<8x128xf32>
    %30 = arith.addf %29, %24 : vector<8x128xf32>
    %c0_12 = arith.constant 0 : index
    %c0_13 = arith.constant 0 : index
    %31 = vector.load %arg6[%c0_12, %c0_13] : memref<8x128xf32, #tpu.memory_space<vmem>>, vector<8x128xf32>
    tpu.vector_store %arg6[%c0_12, %c0_13], %30 {strides = array<i32>} : memref<8x128xf32, #tpu.memory_space<vmem>>, vector<8x128xf32>,
    %c0_14 = arith.constant 0 : index
    %c0_15 = arith.constant 0 : index
    %32 = vector.load %arg7[%c0_14, %c0_15] : memref<8x128xf32, #tpu.memory_space<vmem>>, vector<8x128xf32>
    %33 = arith.addf %32, %25 : vector<8x128xf32>
    %c0_16 = arith.constant 0 : index
    %c0_17 = arith.constant 0 : index
    %34 = vector.load %arg7[%c0_16, %c0_17] : memref<8x128xf32, #tpu.memory_space<vmem>>, vector<8x128xf32>
    tpu.vector_store %arg7[%c0_16, %c0_17], %33 {strides = array<i32>} : memref<8x128xf32, #tpu.memory_space<vmem>>, vector<8x128xf32>,
    %c0_i32_18 = arith.constant 0 : i32
    %35 = arith.cmpi eq, %arg1, %c0_i32_18 : i32
    %36 = arith.extui %35 : i1 to i32
    %c0_i32_19 = arith.constant 0 : i32
    %37 = arith.cmpi ne, %36, %c0_i32_19 : i32
    scf.if %37 {
      %c0_20 = arith.constant 0 : index
      %c0_21 = arith.constant 0 : index
      %38 = vector.load %arg5[%c0_20, %c0_21] : memref<8x128xf32, #tpu.memory_space<vmem>>, vector<8x128xf32>
      %cst_22 = arith.constant dense<0.000000e+00> : vector<128xf32>
      %39 = vector.multi_reduction <add>, %38, %cst_22 [0] : vector<8x128xf32> to vector<128xf32>
      %c0_23 = arith.constant 0 : index
      %c0_24 = arith.constant 0 : index
      %40 = vector.load %arg6[%c0_23, %c0_24] : memref<8x128xf32, #tpu.memory_space<vmem>>, vector<8x128xf32>
      %cst_25 = arith.constant dense<0.000000e+00> : vector<128xf32>
      %41 = vector.multi_reduction <add>, %40, %cst_25 [0] : vector<8x128xf32> to vector<128xf32>
      %c0_26 = arith.constant 0 : index
      %c0_27 = arith.constant 0 : index
      %42 = vector.load %arg7[%c0_26, %c0_27] : memref<8x128xf32, #tpu.memory_space<vmem>>, vector<8x128xf32>
      %cst_28 = arith.constant dense<0.000000e+00> : vector<128xf32>
      %43 = vector.multi_reduction <add>, %42, %cst_28 [0] : vector<8x128xf32> to vector<128xf32>
      %44 = vector.shape_cast %39 : vector<128xf32> to vector<1x128xf32>
      %45 = vector.shape_cast %41 : vector<128xf32> to vector<1x128xf32>
      %46 = vector.shape_cast %43 : vector<128xf32> to vector<1x128xf32>
      %47 = tpu.concatenate %44, %45, %46 in 0 : vector<1x128xf32>, vector<1x128xf32>, vector<1x128xf32> -> vector<3x128xf32>
      %48 = vector.shape_cast %47 : vector<3x128xf32> to vector<1x3x128xf32>
      %c0_29 = arith.constant 0 : index
      %c0_30 = arith.constant 0 : index
      %c0_31 = arith.constant 0 : index
      %49 = vector.load %arg4[%c0_29, %c0_30, %c0_31] : memref<1x3x128xf32, #tpu.memory_space<vmem>>, vector<1x3x128xf32>
      tpu.vector_store %arg4[%c0_29, %c0_30, %c0_31], %48 {strides = array<i32>} : memref<1x3x128xf32, #tpu.memory_space<vmem>>, vector<1x3x128xf32>,
    } else {
    }
    return
  }
  func.func @transform_0(%arg0: i32, %arg1: i32) -> (i32, i32) {
    %c1_i32 = arith.constant 1 : i32
    %0 = arith.muli %arg0, %c1_i32 : i32
    %1 = arith.addi %0, %arg1 : i32
    %c0_i32 = arith.constant 0 : i32
    %c0_i32_0 = arith.constant 0 : i32
    return %1, %c0_i32 : i32, i32
  }
  func.func @transform_1(%arg0: i32, %arg1: i32) -> (i32, i32) {
    %c1_i32 = arith.constant 1 : i32
    %0 = arith.muli %arg0, %c1_i32 : i32
    %1 = arith.addi %0, %arg1 : i32
    %c0_i32 = arith.constant 0 : i32
    %c0_i32_0 = arith.constant 0 : i32
    return %1, %c0_i32 : i32, i32
  }
  func.func @transform_2(%arg0: i32, %arg1: i32) -> (i32, i32, i32) {
    %c0_i32 = arith.constant 0 : i32
    %c0_i32_0 = arith.constant 0 : i32
    %c0_i32_1 = arith.constant 0 : i32
    return %arg0, %c0_i32, %c0_i32_0 : i32, i32, i32
  }
}

</mosaic_0001>

<bundles_post_ra>
// kernel: tpu_custom_call.1
= control target key start
LH: loop header
LB: loop body
LE: loop exit
PB: predicated region body
PF: predicated region fallthrough
CT: control target
= control target key end

     0   :  { %7 = vsyncpa [#allocation6], 0  ;;  %s684_s0 = inlined_call_operand.hbm [shape: f32[16,128], index: 0, kind: input, shape index: {}]   ;;  %s685_s1 = inlined_call_operand.hbm [shape: f32[16,128], index: 1, kind: input, shape index: {}]   ;;  %s686_s2 = inlined_call_operand.vmem [shape: f32[2,3,128], index: 2, kind: output, shape index: {}]  }
   0x1   :  { %9 = vsyncpa [#allocation6 + $0x1], 0 }
   0x2   :  { %10 = vsyncpa [#allocation8], 0 }
   0x3   :  { %12 = vsyncpa [#allocation8 + $0x1], 0  ;;  %s589_s9 = smov 0   ;;  %s591_s10 = smov 0  }
   0x4   :  { %s593_s11 = smov 0   ;;  %s595_s12 = smov 0  }
   0x5   :  { %s597_s13 = smov 0   ;;  %s599_s14 = smov 0  }
   0x6 LB: > { %s380_s15 = sadd.s32 4294967295, %s572_s14   ;;  %s30_s16 = sadd.s32 1, %s568_s13  ;;  %s572_s14 = sphi %s599_s14, %s18_s14   ;;  %s568_s13 = sphi %s597_s13, %s693_s13   ;;  %s564_s12 = sphi %s595_s12, %s692_s12   ;;  %s560_s11 = sphi %s593_s11, %s691_s11   ;;  %s556_s10 = sphi %s591_s10, %s690_s10   ;;  %s552_s9 = sphi %s589_s9, %s689_s9  }
   0x7   : > { %p32_p0 = scmp.ge.s32.totalorder %s30_s16, 2  ;;  %s39_s17 = sadd.s32 1, %s560_s11 }
   0x8   : > { %p46_p1 = scmp.ne.s32.totalorder %s560_s11, %s556_s10  ;;  %p47_p2 = scmp.eq.s32.totalorder %s572_s14, 0 }
   0x9   : > { %s695_s16 = smov (%p32_p0, %s30_s16), 0  ;;  %p52_p4 = scmp.ne.s32.totalorder %s556_s10, %s552_s9 }
   0xa   : > { %p625_p3 = por %p47_p2, %p46_p1  ;;  %s36_s19 = ssub.s32 %s568_s13, %s695_s16 }
   0xb   : > { %p53_p5 = scmp.eq.s32.totalorder %s380_s15, 0  ;;  %p37_p6 = scmp.eq.s32.totalorder %s36_s19, 0 }
   0xc   : > { %p405_p8 = scmp.lt.s32.totalorder %s572_s14, 2  ;;  %s130_s22 = sand.u32 1, %s560_s11  }
   0xd   : > { %p632_p7 = por %p53_p5, %p52_p4  ;;  %s385_s23 = sshll.u32 %s568_s13, 3 }
   0xe   : > { %s638_s21 = scalar_select %p37_p6, %s560_s11, %s39_s17  }
   0xf   : > { %s384_s24 = sshll.u32 %s130_s22, 3  ;;  %s139_s27 = scalar_lea.hbm %s684_s0, %s385_s23 }
  0x10   : > { %s141_s28 = sshll.u32 %s139_s27, 4  ;;  %s134_s29 = scalar_lea.vmem [#allocation5], %s384_s24  ;;  %s142_s28 = int_to_ptr.hbm [resolvable:$true] %s141_s28 }
  0x11   : > { %s143_s30 = sshll.u32 %s134_s29, 4  ;;  %p399_p9 = pnand %p405_p8, %p625_p3  ;;  %s144_s30 = int_to_ptr.vmem [resolvable:$true] %s143_s30 }
  0x12   : > { %p388_p10 = scmp.ge.s32.totalorder %s572_s14, 1  ;;  %p168_p11 = scmp.lt.s32.totalorder %s572_s14, 3 }
  0x13   : > { %s131_s3 = scalar_lea.sflag [#allocation6], %s130_s22  ;;  %s159_s6 = scalar_lea.hbm %s685_s1, %s385_s23 }
  0x14   : > { %401 = dma.hbm_to_vmem [thread:$0]  (!%p399_p9), %s142_s28, 128, %s144_s30, %s131_s3  }
  0x15   : > { %p169_p12 = pnand %p388_p10, %p168_p11  ;;  %s161_s7 = sshll.u32 %s159_s6, 4  ;;  %s162_s7 = int_to_ptr.hbm [resolvable:$true] %s161_s7 }
  0x16   : > { %s154_s8 = scalar_lea.vmem [#allocation7], %s384_s24  ;;  %s151_s15 = scalar_lea.sflag [#allocation8], %s130_s22 }
  0x17   : > { %s163_s9 = sshll.u32 %s154_s8, 4  ;;  %172 = sbr.rel (%p169_p12) target bundleno = 65 (0x41), region = 28  ;;  %s164_s9 = int_to_ptr.vmem [resolvable:$true] %s163_s9 }
  0x18   : > { %404 = dma.hbm_to_vmem [thread:$0]  (!%p399_p9), %s162_s7, 128, %s164_s9, %s151_s15  }
  0x19   : > { %s174_s17 = sand.u32 (!%p169_p12), 1, %s556_s10  }
  0x1a   : > { %s389_s18 = sshll.u32 (!%p169_p12), %s174_s17, 3  ;;  %s175_s19 = scalar_lea.sflag (!%p169_p12), [#allocation6], %s174_s17 }
  0x1b   : > { %s178_s25 = scalar_lea.vmem (!%p169_p12), [#allocation5], %s389_s18 }
  0x1c   : > { %543 = dma.done.wait (%p632_p7), %s175_s19, 128  }
  0x1d   : > { %545 = vsyncadd (%p632_p7), %s175_s19, 4294967168  ;;  %s185_s23 = scalar_lea.sflag [#allocation8], %s174_s17  ;;  %s188_s24 = scalar_lea.vmem [#allocation7], %s389_s18 }
  0x1e   : > { %547 = dma.done.wait (%p632_p7), %s185_s23, 128  }
  0x1f   : > { %549 = vsyncadd (%p632_p7), %s185_s23, 4294967168  ;;  %v227_v0 = vld [vmem:[%s178_s25] sm:$0xff]  ;;  %v228_v1 = vld [vmem:[%s188_s24] sm:$0xff]  ;;  %p216_p13 = scmp.lt.s32.totalorder %s564_s12, 1  ;;  %vm277_vm0 = vcmask 1040384   ;;  %vm279_vm1 = vcmask 1041408  }
  0x20   : > { %454 = vlog2.f32 %v227_v0  ;;  %v232_v2 = vsub.f32 1.0, %v227_v0  ;;  %v239_v3 = vmul.f32 %v228_v1, %v227_v0  ;;  %v241_v4 = vadd.f32 %v228_v1, %v227_v0 }
  0x21   : > { %s697_s12 = smov (!%p216_p13, %s564_s12), 1 }
  0x22   : > { %456 = vlog2.f32 %v232_v2  ;;  %v257_v5 = vrot.slane %v239_v3, 4  ;;  %v264_v6 = vrot.slane %v241_v4, 4  ;;  %s391_s20 = sshll.u32 %s697_s12, 2 }
  0x23   : > { %s219_s27 = scalar_lea.vmem %s686_s2, %s391_s20 }
  0x24   : > { %v258_v10 = vadd.f32 %v257_v5, %v239_v3  ;;  %v265_v11 = vadd.f32 %v264_v6, %v241_v4 }
  0x26   : > { %v455_v7 = vpop.eup %454  ;;  %v259_v15 = vrot.slane %v258_v10, 2  ;;  %v266_v16 = vrot.slane %v265_v11, 2 }
  0x27   : > { %v230_v8 = vmul.f32 0.6931472, %v455_v7 }
  0x28   : > { %v457_v9 = vpop.eup %456  ;;  %v260_v19 = vadd.f32 %v259_v15, %v258_v10  ;;  %v267_v20 = vadd.f32 %v266_v16, %v265_v11 }
  0x29   : > { %v231_v12 = vmax.f32 %v230_v8, -100.0  ;;  %v234_v13 = vmul.f32 0.6931472, %v457_v9 }
  0x2a   : > { %v261_v23 = vrot.slane %v260_v19, 1  ;;  %v268_v24 = vrot.slane %v267_v20, 1 }
  0x2b   : > { %v235_v14 = vmax.f32 %v234_v13, -100.0 }
  0x2c   : > { %v262_v27 = vadd.f32 %v261_v23, %v260_v19  ;;  %v269_v28 = vadd.f32 %v268_v24, %v267_v20 }
  0x2d   : > { %v236_v17 = vsub.f32 %v231_v12, %v235_v14 }
  0x2e   : > { %v278_v31 = vsel %vm277_vm0, %v262_v27, %v269_v28 }
  0x2f   : > { %v237_v18 = vmul.f32 %v236_v17, %v228_v1 }
  0x31   : > { %v238_v21 = vadd.f32 %v237_v18, %v235_v14 }
  0x33   : > { %v271_v22 = vrot.slane %v238_v21, 4 }
  0x35   : > { %v272_v25 = vadd.f32 %v271_v22, %v238_v21 }
  0x37   : > { %v273_v26 = vrot.slane %v272_v25, 2 }
  0x39   : > { %v274_v29 = vadd.f32 %v273_v26, %v272_v25 }
  0x3b   : > { %v275_v30 = vrot.slane %v274_v29, 1 }
  0x3d   : > { %v276_v32 = vadd.f32 %v275_v30, %v274_v29 }
  0x3f   : > { %v280_v33 = vsel %vm279_vm1, %v278_v31, %v276_v32 }
  0x40   : > { %281 = vst [vmem:[%s219_s27] sm:$0x7] %v280_v33 }
  0x41 PF: > { %s18_s14 = sadd.s32 1, %s572_s14   ;;  %s689_s9 = smov %s556_s10 }
  0x42   : > { %p15_p0 = scmp.ge.s32.totalorder %s18_s14, 4   ;;  %s690_s10 = smov %s560_s11 }
  0x43   : > { %s691_s11 = smov %s638_s21  ;;  %s692_s12 = smov %s568_s13 }
  0x44   : > { %s693_s13 = smov %s695_s16  ;;  %17 = sbr.rel (!%p15_p0) target bundleno = 6 (0x6), region = 89 }
  0x49   :  { %301 = vsyncpa [#allocation6], 1 }
  0x4a   :  { %303 = vsyncpa [#allocation6 + $0x1], 1 }
  0x4b   :  { %304 = vsyncpa [#allocation8], 1 }
  0x4c   :  { %306 = vsyncpa [#allocation8 + $0x1], 1 }

</bundles_post_ra>
